<compile_context>
chip_gen: v6e
topology: v6e:2x2x1
jax: 0.10.0
libtpu: 0.0.40
codegen_flags: <defaults>
</compile_context>

<pallas_src>
import functools

import jax
import jax.numpy as jnp
from jax.experimental import pallas as pl
from jax.experimental.pallas import tpu as pltpu

LANE = 128      # vreg lane width: hidden-dim padding target
SUBLANE = 8     # sublane granularity: batch-tile multiple
# Keep the estimated VMEM footprint under this so the kernel fits v7x's
# 64 MiB physical VMEM with headroom (v5e/v6e have 128 MiB).
VMEM_BUDGET = 28 * 1024 * 1024


def _round_up(n, m):
    return ((n + m - 1) // m) * m


def _vmem_bytes(tb, in_dim, dp, out_dim, weight_buffers):
    """Rough lane-rounded VMEM footprint used to size tb and vmem_limit_bytes."""
    in_l = _round_up(in_dim, LANE)
    out_l = _round_up(out_dim, LANE)
    x_io = 2 * tb * in_l * 4                                  # x double buffer (f32)
    out_io = 2 * tb * out_l * 4                               # out double buffer
    w = weight_buffers * 2 * (16 * dp + dp * dp + dp * out_l)  # bf16 weights
    b = weight_buffers * 4 * 8 * (dp + dp + out_l)            # f32 biases (sublane-padded)
    inter = tb * dp * (4 + 4 + 2 + 2) + tb * out_l * 4        # h1/h2 f32 + bf16 casts + acc
    return x_io + out_io + w + b + inter


def mlp_kernel(x_ref, w1_ref, b1_ref, w2_ref, b2_ref, w3_ref, b3_ref, o_ref):
    """One batch tile: 3 matmuls (bf16 on the MXU, f32 accumulate) + f32 bias/ReLU."""
    cdt = w1_ref.dtype                      # matmul-input (compute) dtype
    # x arrives f32 straight from HBM; cast to the matmul dtype here (VPU work
    # hidden under the MXU) instead of paying a separate XLA cast pass in HBM.
    x = x_ref[...].astype(cdt)              # [TB, 8]

    # Layer 1: [TB, 8] @ [8, Dp] -> f32, + bias, ReLU.
    h1 = jnp.dot(x, w1_ref[...], preferred_element_type=jnp.float32)
    h1 = jnp.maximum(h1 + b1_ref[...], 0.0)

    # Layer 2: [TB, Dp] @ [Dp, Dp].
    h2 = jnp.dot(h1.astype(cdt), w2_ref[...], preferred_element_type=jnp.float32)
    h2 = jnp.maximum(h2 + b2_ref[...], 0.0)

    # Layer 3: [TB, Dp] @ [Dp, out_dim] -> store at the true (narrow) width.
    out = jnp.dot(h2.astype(cdt), w3_ref[...], preferred_element_type=jnp.float32)
    o_ref[...] = (out + b3_ref[...]).astype(o_ref.dtype)


def prepare_params(params, *, compute_dtype=jnp.bfloat16):
    """Zero-pad the hidden dim to a multiple of 128 and cast weights to bf16.

    Padded weight rows/cols and biases are zero, so padded hidden lanes are
    relu(0) == 0 and contribute nothing downstream -- the computation on the
    real lanes is exact. The input (8) and output (4) dims stay unpadded.
    """
    w1, b1 = params["w1"], params["b1"]
    w2, b2 = params["w2"], params["b2"]
    w3, b3 = params["w3"], params["b3"]
    dim = w1.shape[1]
    dp = _round_up(dim, LANE)

    def pad_to(a, rows, cols):
        return jnp.pad(a, ((0, rows - a.shape[0]), (0, cols - a.shape[1])))

    return {
        "w1": pad_to(w1, w1.shape[0], dp).astype(compute_dtype),   # [8, Dp]
        "b1": pad_to(b1, 1, dp).astype(jnp.float32),                # [1, Dp]
        "w2": pad_to(w2, dp, dp).astype(compute_dtype),             # [Dp, Dp]
        "b2": pad_to(b2, 1, dp).astype(jnp.float32),                # [1, Dp]
        "w3": pad_to(w3, dp, w3.shape[1]).astype(compute_dtype),    # [Dp, 4]
        "b3": b3.astype(jnp.float32),                               # [1, 4]
    }


@functools.partial(jax.jit, static_argnames=("block_b", "out_dtype"))
def mlp_forward(x, padded, *, block_b=2048, out_dtype=jnp.float32):
    """x: [B, 8] float32. padded: prepare_params(...). Returns [B, out_dim].

    out_dtype=jnp.bfloat16 halves output write bytes (helps v5e's single vst
    slot) if the consumer tolerates it; default f32 preserves the PyTorch
    module's output dtype.
    """
    w1, b1 = padded["w1"], padded["b1"]
    w2, b2 = padded["w2"], padded["b2"]
    w3, b3 = padded["w3"], padded["b3"]

    B, in_dim = x.shape
    dp = w2.shape[0]
    out_dim = w3.shape[1]

    # Batch tile: large (512+ rows) to amortize per-step pipeline overhead and
    # approach the HBM roofline, but always >= 2 grid steps so both v7x
    # TensorCores get work; shrunk if the VMEM estimate would not fit.
    tb = min(block_b, _round_up(pl.cdiv(B, 2), SUBLANE))
    tb = max(SUBLANE, _round_up(tb, SUBLANE))

    # Weights stay VMEM-resident (constant index_map). For large hidden dims,
    # drop their double buffer (never revisited -> 1 buffer suffices) to
    # protect v7x's smaller VMEM. Small dims keep the default (zero risk).
    weight_buffers = 1 if dp >= 1024 else 2
    while tb > SUBLANE and _vmem_bytes(tb, in_dim, dp, out_dim, weight_buffers) > VMEM_BUDGET:
        tb = max(SUBLANE, _round_up(tb // 2, SUBLANE))

    # Last tile may be partial; Pallas clips the boundary input/output DMAs,
    # so no wrapper-side batch padding pass is needed.
    grid = (pl.cdiv(B, tb),)

    def weight_spec(shape):
        if weight_buffers == 1:
            return pl.BlockSpec(shape, lambda i: (0, 0), pipeline_mode=pl.Buffered(1))
        return pl.BlockSpec(shape, lambda i: (0, 0))

    vmem_est = _vmem_bytes(tb, in_dim, dp, out_dim, weight_buffers)
    vmem_limit = int(min(max(2 * vmem_est, 32 * 1024 * 1024), 60 * 1024 * 1024))

    # Advisory cost so XLA schedules neighbors around the (now longer) kernel.
    w_bytes = 2 * (in_dim * dp + dp * dp + dp * out_dim) + 4 * (2 * dp + out_dim)
    cost = pl.CostEstimate(
        flops=2 * B * (in_dim * dp + dp * dp + dp * out_dim),
        transcendentals=0,
        bytes_accessed=B * in_dim * 4 + w_bytes
        + B * out_dim * jnp.dtype(out_dtype).itemsize,
    )

    return pl.pallas_call(
        mlp_kernel,
        out_shape=jax.ShapeDtypeStruct((B, out_dim), out_dtype),
        grid=grid,
        in_specs=[
            pl.BlockSpec((tb, in_dim), lambda i: (i, 0)),   # x: tiled over batch (f32)
            weight_spec(w1.shape), weight_spec(b1.shape),
            weight_spec(w2.shape), weight_spec(b2.shape),
            weight_spec(w3.shape), weight_spec(b3.shape),
        ],
        # Narrow (out_dim-wide) store: ~16 B/row instead of a 128-lane padded
        # f32 slab plus a wrapper slice pass. Legal because the block last-dim
        # equals the full array dim.
        out_specs=pl.BlockSpec((tb, out_dim), lambda i: (i, 0)),
        compiler_params=pltpu.CompilerParams(
            dimension_semantics=("parallel",),
            vmem_limit_bytes=vmem_limit),
        cost_estimate=cost,
    )(x, w1, b1, w2, b2, w3, b3)


def init_params(key, dim):
    """Deterministic synthetic init mirroring PyTorch Linear shapes.

    PyTorch Linear(in, out) has weight [out, in], bias [out]; we store the
    transposed weight [in, out] and bias as a [1, out] row.
    """
    def linear(k, fan_in, fan_out):
        kw, kb = jax.random.split(k)
        bound = 1.0 / jnp.sqrt(fan_in)
        w = jax.random.uniform(kw, (fan_in, fan_out), jnp.float32, -bound, bound)
        b = jax.random.uniform(kb, (1, fan_out), jnp.float32, -bound, bound)
        return w, b

    k1, k2, k3 = jax.random.split(key, 3)
    w1, b1 = linear(k1, 8, dim)
    w2, b2 = linear(k2, dim, dim)
    w3, b3 = linear(k3, dim, 4)
    return {"w1": w1, "b1": b1, "w2": w2, "b2": b2, "w3": w3, "b3": b3}


def reference_forward(x, params, compute_dtype=jnp.float32):
    """Pure-JAX reference. compute_dtype mirrors the kernel's matmul precision."""
    def lin(h, w, b):
        return jnp.dot(h.astype(compute_dtype), w.astype(compute_dtype),
                       preferred_element_type=jnp.float32) + b
    h1 = jnp.maximum(lin(x, params["w1"], params["b1"]), 0.0)
    h2 = jnp.maximum(lin(h1, params["w2"], params["b2"]), 0.0)
    return lin(h2, params["w3"], params["b3"])


if __name__ == "__main__":
    key = jax.random.PRNGKey(0)
    k_param, k_x = jax.random.split(key)

    dim = 32        # hidden dim of the MLP
    batch = 16      # small test batch -> tb = 8, a 2-tile grid (exercises pipelining)

    params = init_params(k_param, dim)
    x = jax.random.normal(k_x, (batch, 8), jnp.float32)

    padded = prepare_params(params, compute_dtype=jnp.bfloat16)
    out = mlp_forward(x, padded)
    out = jax.block_until_ready(out)
    assert out.shape == (batch, 4)

    # Tight check vs a reference using the same bf16-matmul / f32-accumulate numerics.
    ref_bf16 = reference_forward(x, params, compute_dtype=jnp.bfloat16)
    assert jnp.allclose(out, ref_bf16, atol=1e-4, rtol=1e-4), "mismatch vs bf16 reference"

    # Loose semantic check vs the full-f32 PyTorch-equivalent forward.
    ref_f32 = reference_forward(x, params, compute_dtype=jnp.float32)
    assert jnp.allclose(out, ref_f32, atol=3e-2, rtol=3e-2), "mismatch vs f32 reference"

    print("KERNEL_OK")
</pallas_src>

<mosaic_0001>
module attributes {stable_mosaic.version = 11 : i64} {
  func.func @mlp_kernel(%arg0: i32, %arg1: memref<8x8xf32, #tpu.memory_space<vmem>>, %arg2: memref<8x128xbf16, #tpu.memory_space<vmem>>, %arg3: memref<1x128xf32, #tpu.memory_space<vmem>>, %arg4: memref<128x128xbf16, #tpu.memory_space<vmem>>, %arg5: memref<1x128xf32, #tpu.memory_space<vmem>>, %arg6: memref<128x4xbf16, #tpu.memory_space<vmem>>, %arg7: memref<1x4xf32, #tpu.memory_space<vmem>>, %arg8: memref<8x4xf32, #tpu.memory_space<vmem>>) attributes {dimension_semantics = [#tpu.dimension_semantics<parallel>], iteration_bounds = array<i64: 2>, scalar_prefetch = 0 : i64, scratch_operands = 0 : i64, tpu.core_type = #tpu.core_type<tc>, window_params = [{transform_indices = @transform_0, window_bounds = array<i64: 8, 8>}, {pipeline_mode = #tpu.pipeline_mode<synchronous>, transform_indices = @transform_1, window_bounds = array<i64: 8, 128>}, {pipeline_mode = #tpu.pipeline_mode<synchronous>, transform_indices = @transform_2, window_bounds = array<i64: 1, 128>}, {pipeline_mode = #tpu.pipeline_mode<synchronous>, transform_indices = @transform_3, window_bounds = array<i64: 128, 128>}, {pipeline_mode = #tpu.pipeline_mode<synchronous>, transform_indices = @transform_4, window_bounds = array<i64: 1, 128>}, {pipeline_mode = #tpu.pipeline_mode<synchronous>, transform_indices = @transform_5, window_bounds = array<i64: 128, 4>}, {pipeline_mode = #tpu.pipeline_mode<synchronous>, transform_indices = @transform_6, window_bounds = array<i64: 1, 4>}, {transform_indices = @transform_7, window_bounds = array<i64: 8, 4>}]} {
    %c0 = arith.constant 0 : index
    %c0_0 = arith.constant 0 : index
    %0 = vector.load %arg1[%c0, %c0_0] : memref<8x8xf32, #tpu.memory_space<vmem>>, vector<8x8xf32>
    %1 = arith.truncf %0 : vector<8x8xf32> to vector<8x8xbf16>
    %c0_1 = arith.constant 0 : index
    %c0_2 = arith.constant 0 : index
    %2 = vector.load %arg2[%c0_1, %c0_2] : memref<8x128xbf16, #tpu.memory_space<vmem>>, vector<8x128xbf16>
    %cst = arith.constant dense<0.000000e+00> : vector<8x128xf32>
    %3 = tpu.matmul %1, %2, %cst {dimension_numbers = #tpu.dot_dimension_numbers<[1], [0], [0], [1], [0, 0, 1, 1], [], []>} : vector<8x8xbf16>, vector<8x128xbf16>, vector<8x128xf32> -> vector<8x128xf32>
    %c0_3 = arith.constant 0 : index
    %c0_4 = arith.constant 0 : index
    %4 = vector.load %arg3[%c0_3, %c0_4] : memref<1x128xf32, #tpu.memory_space<vmem>>, vector<1x128xf32>
    %5 = vector.broadcast %4 : vector<1x128xf32> to vector<8x128xf32>
    %6 = arith.addf %3, %5 : vector<8x128xf32>
    %cst_5 = arith.constant 0.000000e+00 : f32
    %7 = vector.broadcast %cst_5 : f32 to vector<8x128xf32>
    %8 = arith.maximumf %6, %7 : vector<8x128xf32>
    %9 = arith.truncf %8 : vector<8x128xf32> to vector<8x128xbf16>
    %c0_6 = arith.constant 0 : index
    %c0_7 = arith.constant 0 : index
    %10 = vector.load %arg4[%c0_6, %c0_7] : memref<128x128xbf16, #tpu.memory_space<vmem>>, vector<128x128xbf16>
    %cst_8 = arith.constant dense<0.000000e+00> : vector<8x128xf32>
    %11 = tpu.matmul %9, %10, %cst_8 {dimension_numbers = #tpu.dot_dimension_numbers<[1], [0], [0], [1], [0, 0, 1, 1], [], []>} : vector<8x128xbf16>, vector<128x128xbf16>, vector<8x128xf32> -> vector<8x128xf32>
    %c0_9 = arith.constant 0 : index
    %c0_10 = arith.constant 0 : index
    %12 = vector.load %arg5[%c0_9, %c0_10] : memref<1x128xf32, #tpu.memory_space<vmem>>, vector<1x128xf32>
    %13 = vector.broadcast %12 : vector<1x128xf32> to vector<8x128xf32>
    %14 = arith.addf %11, %13 : vector<8x128xf32>
    %cst_11 = arith.constant 0.000000e+00 : f32
    %15 = vector.broadcast %cst_11 : f32 to vector<8x128xf32>
    %16 = arith.maximumf %14, %15 : vector<8x128xf32>
    %17 = arith.truncf %16 : vector<8x128xf32> to vector<8x128xbf16>
    %c0_12 = arith.constant 0 : index
    %c0_13 = arith.constant 0 : index
    %18 = vector.load %arg6[%c0_12, %c0_13] : memref<128x4xbf16, #tpu.memory_space<vmem>>, vector<128x4xbf16>
    %cst_14 = arith.constant dense<0.000000e+00> : vector<8x4xf32>
    %19 = tpu.matmul %17, %18, %cst_14 {dimension_numbers = #tpu.dot_dimension_numbers<[1], [0], [0], [1], [0, 0, 1, 1], [], []>} : vector<8x128xbf16>, vector<128x4xbf16>, vector<8x4xf32> -> vector<8x4xf32>
    %c0_15 = arith.constant 0 : index
    %c0_16 = arith.constant 0 : index
    %20 = vector.load %arg7[%c0_15, %c0_16] : memref<1x4xf32, #tpu.memory_space<vmem>>, vector<1x4xf32>
    %21 = vector.broadcast %20 : vector<1x4xf32> to vector<8x4xf32>
    %22 = arith.addf %19, %21 : vector<8x4xf32>
    %c0_17 = arith.constant 0 : index
    %c0_18 = arith.constant 0 : index
    %23 = vector.load %arg8[%c0_17, %c0_18] : memref<8x4xf32, #tpu.memory_space<vmem>>, vector<8x4xf32>
    tpu.vector_store %arg8[%c0_17, %c0_18], %22 {strides = array<i32>} : memref<8x4xf32, #tpu.memory_space<vmem>>, vector<8x4xf32>,
    return
  }
  func.func @transform_0(%arg0: i32) -> (i32, i32) {
    %c0_i32 = arith.constant 0 : i32
    %c0_i32_0 = arith.constant 0 : i32
    return %arg0, %c0_i32 : i32, i32
  }
  func.func @transform_1(%arg0: i32) -> (i32, i32) {
    %c0_i32 = arith.constant 0 : i32
    %c0_i32_0 = arith.constant 0 : i32
    %c0_i32_1 = arith.constant 0 : i32
    return %c0_i32, %c0_i32_0 : i32, i32
  }
  func.func @transform_2(%arg0: i32) -> (i32, i32) {
    %c0_i32 = arith.constant 0 : i32
    %c0_i32_0 = arith.constant 0 : i32
    %c0_i32_1 = arith.constant 0 : i32
    return %c0_i32, %c0_i32_0 : i32, i32
  }
  func.func @transform_3(%arg0: i32) -> (i32, i32) {
    %c0_i32 = arith.constant 0 : i32
    %c0_i32_0 = arith.constant 0 : i32
    %c0_i32_1 = arith.constant 0 : i32
    return %c0_i32, %c0_i32_0 : i32, i32
  }
  func.func @transform_4(%arg0: i32) -> (i32, i32) {
    %c0_i32 = arith.constant 0 : i32
    %c0_i32_0 = arith.constant 0 : i32
    %c0_i32_1 = arith.constant 0 : i32
    return %c0_i32, %c0_i32_0 : i32, i32
  }
  func.func @transform_5(%arg0: i32) -> (i32, i32) {
    %c0_i32 = arith.constant 0 : i32
    %c0_i32_0 = arith.constant 0 : i32
    %c0_i32_1 = arith.constant 0 : i32
    return %c0_i32, %c0_i32_0 : i32, i32
  }
  func.func @transform_6(%arg0: i32) -> (i32, i32) {
    %c0_i32 = arith.constant 0 : i32
    %c0_i32_0 = arith.constant 0 : i32
    %c0_i32_1 = arith.constant 0 : i32
    return %c0_i32, %c0_i32_0 : i32, i32
  }
  func.func @transform_7(%arg0: i32) -> (i32, i32) {
    %c0_i32 = arith.constant 0 : i32
    %c0_i32_0 = arith.constant 0 : i32
    return %arg0, %c0_i32 : i32, i32
  }
}

</mosaic_0001>

<bundles_post_ra>
// kernel: mlp_forward.1
= control target key start
LH: loop header
LB: loop body
LE: loop exit
PB: predicated region body
PF: predicated region fallthrough
CT: control target
= control target key end

     0   :  { %s785_s24 = smov 0   ;;  %s892_s0 = inlined_call_operand.vmem [shape: f32[16,8], index: 0, kind: input, shape index: {}]   ;;  %s893_s1 = inlined_call_operand.vmem [shape: bf16[8,128], index: 1, kind: input, shape index: {}]   ;;  %s894_s2 = inlined_call_operand.vmem [shape: f32[1,128], index: 2, kind: input, shape index: {}]   ;;  %s895_s3 = inlined_call_operand.vmem [shape: bf16[128,128], index: 3, kind: input, shape index: {}]   ;;  %s896_s4 = inlined_call_operand.vmem [shape: f32[1,128], index: 4, kind: input, shape index: {}]   ;;  %s897_s5 = inlined_call_operand.vmem [shape: bf16[128,4], index: 5, kind: input, shape index: {}]   ;;  %s898_s6 = inlined_call_operand.vmem [shape: f32[1,4], index: 6, kind: input, shape index: {}]   ;;  %s899_s7 = inlined_call_operand.vmem [shape: f32[16,4], index: 7, kind: output, shape index: {}]  }
   0x1 LB: > { %s614_s25 = sadd.s32 4294967295, %s741_s24   ;;  %p618_p0 = scmp.ge.s32.totalorder %s741_s24, 1  ;;  %s741_s24 = sphi %s785_s24, %s17_s24  }
   0x2   : > { %p236_p1 = scmp.lt.s32.totalorder %s741_s24, 3 }
   0x4   : > { %p237_p2 = pnand %p618_p0, %p236_p1 }
   0x5   : > { %p266_p3 = scmp.lt.s32.totalorder (!%p237_p2), %s614_s25, 1 }
   0x6   : > { %240 = sbr.rel (%p237_p2) target bundleno = 614 (0x266), region = 48 }
   0xb   : > { %v277_v0 = vld [vmem:[%s893_s1] sm:$0xf]  ;;  %vm289_vm0 = vcmask 1043456   ;;  %v743_v1 = vmov 0.0   ;;  %vm744_vm1 = vmmov 0   ;;  %s901_s25 = smov (!%p266_p3, %s614_s25), 1 }
   0xc   : > { %663 = vmatprep.subr.bf16.mxu0 %v743_v1  ;;  %v291_v2 = vsel %vm289_vm0, %v277_v0, 0  ;;  %665 = vmatprep.mubr.msk.bf16.mxu0 %vm744_vm1, %v743_v1  ;;  %v719_v3 = vld [vmem:[%s895_s3 + $0x38] sm:$0xff]   ;;  %s619_s30 = sshll.u32 %s901_s25, 3  ;;  %v720_v4 = vld [vmem:[%s895_s3 + $0x30] sm:$0xff]   ;;  %vm285_vm2 = vcmask 64512   ;;  %v721_v7 = vld [vmem:[%s895_s3 + $0x28] sm:$0xff]  }
   0xd   : > { %664 = vmatpush3.bf16.msra.mxu0 %v291_v2  ;;  %669 = vmatprep.subr.bf16.mxu1 %v743_v1  ;;  %s269_s12 = scalar_lea.vmem %s892_s0, %s619_s30  ;;  %v722_v8 = vld [vmem:[%s895_s3 + $0x20] sm:$0xff]   ;;  %v723_v9 = vld [vmem:[%s895_s3 + $0x18] sm:$0xff]   ;;  %v724_v10 = vld [vmem:[%s895_s3 + $0x10] sm:$0xff]   ;;  %s273_s9 = scalar_lea.vmem %s899_s7, %s619_s30  ;;  %vm559_vm3 = vcmask 31744  }
   0xe   : > { %685 = vmatprep.mubr.msk.bf16.mxu1 %vm744_vm1, %v743_v1  ;;  %689 = vmatprep.subr.bf16.mxu0 %v743_v1  ;;  %v275_v5 = vld [vmem:[%s269_s12] sm:$0xff]  ;;  %v725_v11 = vld [vmem:[%s895_s3 + $0x8] sm:$0xff]   ;;  %v727_v13 = vld [vmem:[%s897_s5 + $0x38] sm:$0xff]  }
   0xf   : > { %670 = vmatpush3.bf16.msra.mxu1 %v719_v3  ;;  %v276_v6 = vpack.c.bf16 %v275_v5, %v275_v5  ;;  %v726_v12 = vld [vmem:[%s895_s3] sm:$0xff]   ;;  %v728_v14 = vld [vmem:[%s897_s5 + $0x30] sm:$0xff]   ;;  %v729_v15 = vld [vmem:[%s897_s5 + $0x28] sm:$0xff]  }
  0x10   : > { %671 = vmatprep.subr.bf16.mxu1 %v743_v1  ;;  %v730_v16 = vld [vmem:[%s897_s5 + $0x20] sm:$0xff]   ;;  %v731_v17 = vld [vmem:[%s897_s5 + $0x18] sm:$0xff]   ;;  %v732_v18 = vld [vmem:[%s897_s5 + $0x10] sm:$0xff]  }
  0x11   : > { %666 = vmatmul.mubr.msk.bf16.vlgmr.msra.gmra.mxu0 %vm285_vm2, %v276_v6  ;;  %v621_v19 = vld [vmem:[%s894_s2] ss:$0 sm:$0xff]  ;;  %v733_v27 = vld [vmem:[%s897_s5 + $0x8] sm:$0xff]  }
  0x12   : > { %705 = vmatprep.mubr.msk.bf16.mxu0 %vm744_vm1, %v743_v1  ;;  %690 = vmatpush3.bf16.msra.mxu0 %v727_v13  ;;  %v734_v28 = vld [vmem:[%s897_s5] sm:$0xff]  }
  0x13   : > { %672 = vmatpush3.bf16.msra.mxu1 %v720_v4  ;;  %691 = vmatprep.subr.bf16.mxu0 %v743_v1  ;;  %v623_v29 = vld [vmem:[%s896_s4] ss:$0 sm:$0xff] }
  0x14   : > { %673 = vmatprep.subr.bf16.mxu1 %v743_v1  ;;  %v632_v37 = vld [vmem:[%s898_s6] ss:$0 sm:$0xff] }
  0x16   : > { %692 = vmatpush3.bf16.msra.mxu0 %v728_v14 }
  0x17   : > { %674 = vmatpush3.bf16.msra.mxu1 %v721_v7  ;;  %693 = vmatprep.subr.bf16.mxu0 %v743_v1 }
  0x18   : > { %675 = vmatprep.subr.bf16.mxu1 %v743_v1 }
  0x1a   : > { %694 = vmatpush3.bf16.msra.mxu0 %v729_v15 }
  0x1b   : > { %676 = vmatpush3.bf16.msra.mxu1 %v722_v8  ;;  %695 = vmatprep.subr.bf16.mxu0 %v743_v1 }
  0x1c   : > { %677 = vmatprep.subr.bf16.mxu1 %v743_v1 }
  0x1e   : > { %696 = vmatpush3.bf16.msra.mxu0 %v730_v16 }
  0x1f   : > { %678 = vmatpush3.bf16.msra.mxu1 %v723_v9  ;;  %697 = vmatprep.subr.bf16.mxu0 %v743_v1 }
  0x20   : > { %679 = vmatprep.subr.bf16.mxu1 %v743_v1 }
  0x22   : > { %698 = vmatpush3.bf16.msra.mxu0 %v731_v17 }
  0x23   : > { %680 = vmatpush3.bf16.msra.mxu1 %v724_v10  ;;  %699 = vmatprep.subr.bf16.mxu0 %v743_v1 }
  0x24   : > { %681 = vmatprep.subr.bf16.mxu1 %v743_v1 }
  0x26   : > { %700 = vmatpush3.bf16.msra.mxu0 %v732_v18 }
  0x27   : > { %682 = vmatpush3.bf16.msra.mxu1 %v725_v11  ;;  %701 = vmatprep.subr.bf16.mxu0 %v743_v1 }
  0x28   : > { %683 = vmatprep.subr.bf16.mxu1 %v743_v1 }
  0x2a   : > { %702 = vmatpush3.bf16.msra.mxu0 %v733_v27 }
  0x2b   : > { %684 = vmatpush3.bf16.msra.mxu1 %v726_v12  ;;  %703 = vmatprep.subr.bf16.mxu0 %v743_v1 }
  0x2e   : > { %704 = vmatpush3.bf16.msra.mxu0 %v734_v28 }
  0xd1   : > { %v327_v20 = vpop.f32.mrf.mxu0 }
  0xd2   : > { %v328_v21 = vadd.f32 %v621_v19, %v327_v20 }
  0xd3   : > { %v667_v22 = vpop.f32.mrf.mxu0 }
  0xd4   : > { %v333_v23 = vmax.f32 %v328_v21, 0.0 }
  0xd5   : > { %v330_v24 = vpop.f32.mrf.mxu0 }
  0xd6   : > { %v334_v25 = vpack.c.bf16 %v333_v23, %v333_v23 }
  0xd7   : > { %v668_v26 = vpop.f32.mrf.mxu0 }
  0xd8   : > { %686 = vmatmul.mubr.bf16.vlgmr.msra.gmra.mxu1 %v334_v25 }
 0x198   : > { %v440_v30 = vpop.f32.mrf.mxu1 }
 0x199   : > { %v441_v31 = vadd.f32 %v623_v29, %v440_v30 }
 0x19a   : > { %v687_v32 = vpop.f32.mrf.mxu1 }
 0x19b   : > { %v446_v33 = vmax.f32 %v441_v31, 0.0 }
 0x19c   : > { %v443_v34 = vpop.f32.mrf.mxu1 }
 0x19d   : > { %v447_v35 = vpack.c.bf16 %v446_v33, %v446_v33 }
 0x19e   : > { %v688_v36 = vpop.f32.mrf.mxu1 }
 0x19f   : > { %706 = vmatmul.mubr.bf16.vlgmr.msra.gmra.mxu0 %v447_v35 }
 0x25f   : > { %v553_v38 = vpop.f32.mrf.mxu0 }
 0x260   : > { %v554_v39 = vadd.f32 %v632_v37, %v553_v38 }
 0x261   : > { %v707_v40 = vpop.f32.mrf.mxu0 }
 0x262   : > { %560 = vst.msk [vmem:[%s273_s9] sm:$0xff] %vm559_vm3, %v554_v39 }
 0x263   : > { %v556_v41 = vpop.f32.mrf.mxu0 }
 0x265   : > { %v708_v42 = vpop.f32.mrf.mxu0 }
 0x266 PF: > { %s17_s24 = sadd.s32 1, %s741_s24  }
 0x267   : > { %p14_p4 = scmp.ge.s32.totalorder %s17_s24, 4  }
 0x269   :  { %16 = sbr.rel (!%p14_p4) target bundleno = 1 (0x1), region = 78 }

</bundles_post_ra>
